<compile_context>
chip_gen: v5e
topology: v5e:2x2
jax: 0.10.0
libtpu: 0.0.40
codegen_flags: <defaults>
</compile_context>

<pallas_src>
import jax
import jax.numpy as jnp
from jax.experimental import pallas as pl
from jax.experimental.pallas import tpu as pltpu

_EPS = 1e-6  # torch.nn.PairwiseDistance default eps, added to the difference


def _round_up(x, m):
    return ((x + m - 1) // m) * m


def _cdiv(a, b):
    return -(-a // b)


def _vmem_capacity_bytes():
    try:
        v = int(pltpu.get_tpu_info().vmem_capacity_bytes)
    except Exception:
        v = 64 * 1024 * 1024
    # Sanity clamp (per-TensorCore VMEM is 64 MiB on v7x, 128 MiB on v5e/v6e).
    return max(32 * 1024 * 1024, min(v, 128 * 1024 * 1024))


def _num_tensorcores():
    # Megacore parts expose 2 TensorCores behind one Pallas device; splitting the grid
    # lets dimension_semantics=("parallel",) shard across both. Fallback: 1 (no split).
    try:
        kind = jax.devices()[0].device_kind.lower()
    except Exception:
        return 1
    if "v4" in kind or "7" in kind:
        return 2
    return 1


def _make_kernel(tb, d_real, d_pad, b_real):
    needs_lane_mask = d_pad != d_real

    def kernel(a_ref, p_ref, n_ref, out_ref):
        # a_ref / p_ref / n_ref: (tb, d_pad) native-dtype tiles in VMEM
        # out_ref: (1, 8, 128) int32 per-grid-step partial-count block
        a = a_ref[...].astype(jnp.float32)
        p = p_ref[...].astype(jnp.float32)
        n = n_ref[...].astype(jnp.float32)

        dp = a - p + _EPS
        dn = a - n + _EPS
        # Fused single reduction: sum(dp^2 - dn^2) < 0  <=>  ||dp|| < ||dn||.
        diff = dp * dp - dn * dn
        if needs_lane_mask:
            # Zero padded / out-of-bounds feature lanes (handles NaN garbage) so eps is
            # effectively only applied to the real D lanes.
            lane = jax.lax.broadcasted_iota(jnp.int32, (tb, d_pad), 1)
            diff = jnp.where(lane < d_real, diff, 0.0)

        s = jnp.sum(diff, axis=-1, keepdims=True)          # (tb, 1)
        closer = s < 0.0                                    # (tb, 1) bool

        # Mask rows beyond the true batch size (overrunning last block). NaN-safe:
        # NaN comparisons are False and logical_and kills the rest.
        row = pl.program_id(0) * tb + jax.lax.broadcasted_iota(jnp.int32, (tb, 1), 0)
        closer = jnp.logical_and(closer, row < b_real)

        partial = jnp.sum(closer.astype(jnp.int32))         # scalar int32
        out_ref[...] = jnp.full(out_ref.shape, partial, dtype=jnp.int32)

    return kernel


def triplet_accuracy(anchor, positive, negative):
    """Returns an int32 scalar: number of rows where ||a-p+eps|| < ||a-n+eps||."""
    assert anchor.shape == positive.shape == negative.shape
    assert anchor.ndim == 2
    B, D = anchor.shape

    # Stream at native floating width (bf16/f16 halve HBM traffic); otherwise use f32.
    dtype = jnp.result_type(anchor, positive, negative)
    if dtype not in (jnp.dtype(jnp.float32), jnp.dtype(jnp.bfloat16), jnp.dtype(jnp.float16)):
        dtype = jnp.dtype(jnp.float32)
    anchor = anchor.astype(dtype)
    positive = positive.astype(dtype)
    negative = negative.astype(dtype)
    itemsize = dtype.itemsize

    # Lane-dense feature axis (block width; the arrays themselves are NOT padded).
    d_pad = _round_up(max(D, 1), 128)

    # --- Tile sizing against the actual chip VMEM --------------------------------------
    vmem_bytes = _vmem_capacity_bytes()
    vmem_limit = min(int(vmem_bytes * 0.75), 100 * 1024 * 1024)
    budget = vmem_bytes // 2  # headroom below vmem_limit for vregs / misc scratch
    # Per batch-row bytes: 3 inputs x 2 pipeline buffers at native width, plus ~4
    # full-width f32 compute temporaries (upcasts / dp / dn / diff).
    per_row_bytes = 3 * 2 * d_pad * itemsize + 16 * d_pad
    tb_cap = max(8, (budget // per_row_bytes) // 8 * 8)
    row_cap = 4096 if d_pad <= 512 else 1024  # amortize ~0.35us/step overhead for small D
    tb = max(8, min(tb_cap, row_cap, _round_up(B, 8)))

    # Megacore (v7x/v4): make sure the "parallel" axis has at least one block per core.
    ncores = _num_tensorcores()
    if ncores > 1:
        tb = min(tb, max(8, _round_up(_cdiv(B, ncores), 8)))

    grid = _cdiv(B, tb)

    kernel = _make_kernel(tb, D, d_pad, B)
    in_spec = pl.BlockSpec((tb, d_pad), lambda i: (i, 0))

    bytes_accessed = 3 * B * D * itemsize + grid * 8 * 128 * 4
    out = pl.pallas_call(
        kernel,
        out_shape=jax.ShapeDtypeStruct((grid, 8, 128), jnp.int32),
        grid_spec=pltpu.PrefetchScalarGridSpec(
            num_scalar_prefetch=0,
            grid=(grid,),
            in_specs=[in_spec, in_spec, in_spec],
            out_specs=pl.BlockSpec((1, 8, 128), lambda i: (i, 0, 0)),
        ),
        compiler_params=pltpu.CompilerParams(
            dimension_semantics=("parallel",),
            vmem_limit_bytes=vmem_limit,
        ),
        cost_estimate=pl.CostEstimate(
            flops=8 * B * D, transcendentals=0, bytes_accessed=bytes_accessed
        ),
    )(anchor, positive, negative)

    # Tiny final reduction over per-block partial counts (one int32 per grid step).
    return jnp.sum(out[:, 0, 0]).astype(jnp.int32)


def _reference(anchor, positive, negative):
    anchor = anchor.astype(jnp.float32)
    positive = positive.astype(jnp.float32)
    negative = negative.astype(jnp.float32)
    dp = jnp.sqrt(jnp.sum((anchor - positive + _EPS) ** 2, axis=-1))
    dn = jnp.sqrt(jnp.sum((anchor - negative + _EPS) ** 2, axis=-1))
    return jnp.sum((dp < dn).astype(jnp.int32))


if __name__ == "__main__":
    key = jax.random.PRNGKey(0)
    k1, k2, k3, k4, k5, k6 = jax.random.split(key, 6)

    # Case 1: typical small embedding shape (B=8, D=32; D handled by the 128-lane block).
    B, D = 8, 32
    anchor = jax.random.normal(k1, (B, D), dtype=jnp.float32)
    positive = jax.random.normal(k2, (B, D), dtype=jnp.float32)
    negative = jax.random.normal(k3, (B, D), dtype=jnp.float32)

    result = triplet_accuracy(anchor, positive, negative)
    jax.block_until_ready(result)
    ref = _reference(anchor, positive, negative)
    assert int(result) == int(ref), f"mismatch: kernel={int(result)} ref={int(ref)}"

    # Case 2: exercises row masking (B not multiple of 8) and lane masking (D % 128 != 0)
    # with NO wrapper-side padding (overrunning blocks).
    B2, D2 = 10, 200
    anchor2 = jax.random.normal(k4, (B2, D2), dtype=jnp.float32)
    positive2 = jax.random.normal(k5, (B2, D2), dtype=jnp.float32)
    negative2 = jax.random.normal(k6, (B2, D2), dtype=jnp.float32)

    result2 = triplet_accuracy(anchor2, positive2, negative2)
    jax.block_until_ready(result2)
    ref2 = _reference(anchor2, positive2, negative2)
    assert int(result2) == int(ref2), f"mismatch: kernel={int(result2)} ref={int(ref2)}"

    print("KERNEL_OK")
</pallas_src>

<mosaic_0001>
module attributes {stable_mosaic.version = 11 : i64} {
  func.func @kernel(%arg0: i32, %arg1: memref<8x128xf32, #tpu.memory_space<vmem>>, %arg2: memref<8x128xf32, #tpu.memory_space<vmem>>, %arg3: memref<8x128xf32, #tpu.memory_space<vmem>>, %arg4: memref<1x8x128xi32, #tpu.memory_space<vmem>>) attributes {dimension_semantics = [#tpu.dimension_semantics<parallel>], iteration_bounds = array<i64: 1>, scalar_prefetch = 0 : i64, scratch_operands = 0 : i64, tpu.core_type = #tpu.core_type<tc>, window_params = [{transform_indices = @transform_0, window_bounds = array<i64: 8, 128>}, {transform_indices = @transform_1, window_bounds = array<i64: 8, 128>}, {transform_indices = @transform_2, window_bounds = array<i64: 8, 128>}, {transform_indices = @transform_3, window_bounds = array<i64: 1, 8, 128>}]} {
    %c0 = arith.constant 0 : index
    %c0_0 = arith.constant 0 : index
    %0 = vector.load %arg1[%c0, %c0_0] : memref<8x128xf32, #tpu.memory_space<vmem>>, vector<8x128xf32>
    %c0_1 = arith.constant 0 : index
    %c0_2 = arith.constant 0 : index
    %1 = vector.load %arg2[%c0_1, %c0_2] : memref<8x128xf32, #tpu.memory_space<vmem>>, vector<8x128xf32>
    %c0_3 = arith.constant 0 : index
    %c0_4 = arith.constant 0 : index
    %2 = vector.load %arg3[%c0_3, %c0_4] : memref<8x128xf32, #tpu.memory_space<vmem>>, vector<8x128xf32>
    %3 = arith.subf %0, %1 : vector<8x128xf32>
    %cst = arith.constant 9.99999997E-7 : f32
    %4 = vector.broadcast %cst : f32 to vector<8x128xf32>
    %5 = arith.addf %3, %4 : vector<8x128xf32>
    %6 = arith.subf %0, %2 : vector<8x128xf32>
    %cst_5 = arith.constant 9.99999997E-7 : f32
    %7 = vector.broadcast %cst_5 : f32 to vector<8x128xf32>
    %8 = arith.addf %6, %7 : vector<8x128xf32>
    %9 = arith.mulf %5, %5 : vector<8x128xf32>
    %10 = arith.mulf %8, %8 : vector<8x128xf32>
    %11 = arith.subf %9, %10 : vector<8x128xf32>
    %12 = tpu.iota {dimensions = array<i32: 1>} : vector<8x128xi32>
    %c32_i32 = arith.constant 32 : i32
    %13 = vector.broadcast %c32_i32 : i32 to vector<8x128xi32>
    %14 = arith.cmpi slt, %12, %13 : vector<8x128xi32>
    %cst_6 = arith.constant 0.000000e+00 : f32
    %15 = vector.broadcast %cst_6 : f32 to vector<8x128xf32>
    %16 = arith.select %14, %11, %15 : vector<8x128xi1>, vector<8x128xf32>
    %cst_7 = arith.constant dense<0.000000e+00> : vector<8xf32>
    %17 = vector.multi_reduction <add>, %16, %cst_7 [1] : vector<8x128xf32> to vector<8xf32>
    %18 = vector.shape_cast %17 : vector<8xf32> to vector<8x1xf32>
    %cst_8 = arith.constant 0.000000e+00 : f32
    %19 = vector.broadcast %cst_8 : f32 to vector<8x1xf32>
    %20 = arith.cmpf olt, %18, %19 : vector<8x1xf32>
    %c8_i32 = arith.constant 8 : i32
    %21 = arith.muli %arg0, %c8_i32 : i32
    %22 = tpu.iota {dimensions = array<i32: 0>} : vector<8x1xi32>
    %23 = vector.broadcast %21 : i32 to vector<8x1xi32>
    %24 = arith.addi %23, %22 : vector<8x1xi32>
    %c8_i32_9 = arith.constant 8 : i32
    %25 = vector.broadcast %c8_i32_9 : i32 to vector<8x1xi32>
    %26 = arith.cmpi slt, %24, %25 : vector<8x1xi32>
    %27 = arith.andi %20, %26 : vector<8x1xi1>
    %28 = arith.extui %27 : vector<8x1xi1> to vector<8x1xi32>
    %29 = vector.shape_cast %28 : vector<8x1xi32> to vector<1x8x1xi32>
    %cst_10 = arith.constant dense<0> : vector<1xi32>
    %30 = vector.multi_reduction <add>, %29, %cst_10 [1, 2] : vector<1x8x1xi32> to vector<1xi32>
    %31 = vector.shape_cast %30 : vector<1xi32> to vector<1x1x1xi32>
    %32 = vector.extract %31[0, 0, 0] : i32 from vector<1x1x1xi32>
    %33 = vector.broadcast %32 : i32 to vector<1x8x128xi32>
    %c0_11 = arith.constant 0 : index
    %c0_12 = arith.constant 0 : index
    %c0_13 = arith.constant 0 : index
    %34 = vector.load %arg4[%c0_11, %c0_12, %c0_13] : memref<1x8x128xi32, #tpu.memory_space<vmem>>, vector<1x8x128xi32>
    tpu.vector_store %arg4[%c0_11, %c0_12, %c0_13], %33 {strides = array<i32>} : memref<1x8x128xi32, #tpu.memory_space<vmem>>, vector<1x8x128xi32>,
    return
  }
  func.func @transform_0(%arg0: i32) -> (i32, i32) {
    %c0_i32 = arith.constant 0 : i32
    %c0_i32_0 = arith.constant 0 : i32
    return %arg0, %c0_i32 : i32, i32
  }
  func.func @transform_1(%arg0: i32) -> (i32, i32) {
    %c0_i32 = arith.constant 0 : i32
    %c0_i32_0 = arith.constant 0 : i32
    return %arg0, %c0_i32 : i32, i32
  }
  func.func @transform_2(%arg0: i32) -> (i32, i32) {
    %c0_i32 = arith.constant 0 : i32
    %c0_i32_0 = arith.constant 0 : i32
    return %arg0, %c0_i32 : i32, i32
  }
  func.func @transform_3(%arg0: i32) -> (i32, i32, i32) {
    %c0_i32 = arith.constant 0 : i32
    %c0_i32_0 = arith.constant 0 : i32
    %c0_i32_1 = arith.constant 0 : i32
    return %arg0, %c0_i32, %c0_i32_0 : i32, i32, i32
  }
}

</mosaic_0001>

<bundles_post_ra>
// kernel: tpu_custom_call.1
= control target key start
LH: loop header
LB: loop body
LE: loop exit
PB: predicated region body
PF: predicated region fallthrough
CT: control target
= control target key end

     0   :  { %8 = vsyncpa [#allocation3], 0  ;;  %s254_s0 = inlined_call_operand.hbm [shape: f32[8,32], index: 0, kind: input, shape index: {}]   ;;  %s255_s1 = inlined_call_operand.hbm [shape: f32[8,32], index: 1, kind: input, shape index: {}]   ;;  %s256_s2 = inlined_call_operand.hbm [shape: f32[8,32], index: 2, kind: input, shape index: {}]   ;;  %s257_s3 = inlined_call_operand.hbm [shape: s32[1,8,128], index: 3, kind: output, shape index: {}]  }
   0x1   :  { %9 = vsyncpa [#allocation6], 0  ;;  %s27_s14 = sshll.u32 %s255_s1, 4  ;;  %s28_s14 = int_to_ptr.hbm [resolvable:$true] %s27_s14 }
   0x2   :  { %10 = vsyncpa [#allocation4], 0  ;;  %s217_s15 = smov [#allocation5]   ;;  %s16_s19 = sshll.u32 %s254_s0, 4  ;;  %s17_s19 = int_to_ptr.hbm [resolvable:$true] %s16_s19 }
   0x3   :  { %s29_s16 = sshll.u32 %s217_s15, 4  ;;  %s218_s20 = smov [#allocation2]   ;;  %s30_s16 = int_to_ptr.vmem [resolvable:$true] %s29_s16 }
   0x4   :  { %32 = dma.hbm_to_vmem [thread:$0]  %s28_s14, 128, %s30_s16, [#allocation6]  }
   0x5   :  { %s18_s21 = sshll.u32 %s218_s20, 4  ;;  %s38_s24 = sshll.u32 %s256_s2, 4  ;;  %s19_s21 = int_to_ptr.vmem [resolvable:$true] %s18_s21  ;;  %s39_s24 = int_to_ptr.hbm [resolvable:$true] %s38_s24 }
   0x6   :  { %21 = dma.hbm_to_vmem [thread:$0]  %s17_s19, 128, %s19_s21, [#allocation3]  }
   0x7   :  { %s219_s1 = smov [#allocation7]  }
   0x8   :  { %s40_s25 = sshll.u32 %s219_s1, 4  ;;  %s41_s25 = int_to_ptr.vmem [resolvable:$true] %s40_s25 }
   0x9   :  { %43 = dma.hbm_to_vmem [thread:$0]  %s39_s24, 128, %s41_s25, [#allocation6]  }
   0xa   :  { %211 = dma.done.wait [#allocation3], 128  }
   0xb   :  { %212 = vsyncadd [#allocation3], 4294967168 }
   0xc   :  { %213 = dma.done.wait [#allocation6], 256  }
   0xd   :  { %214 = vsyncadd [#allocation6], 4294967040  ;;  %v66_v0 = vlaneseq  ;;  %v56_v1 = vld [vmem:[#allocation2] sm:$0xff]  ;;  %v57_v2 = vld [vmem:[#allocation5] sm:$0xff]  ;;  %v220_v14 = vmov 0   ;;  %s221_s0 = smov [#allocation8]  }
   0xe   :  { %v58_v3 = vld [vmem:[#allocation7] sm:$0xff]  ;;  %v59_v4 = vsub.f32 %v56_v1, %v57_v2  ;;  %s95_s2 = sshll.u32 %s221_s0, 4  ;;  %s97_s28 = sshll.u32 %s257_s3, 4  ;;  %s96_s2 = int_to_ptr.vmem [resolvable:$true] %s95_s2  ;;  %s98_s28 = int_to_ptr.hbm [resolvable:$true] %s97_s28 }
   0xf   :  { %v61_v5 = vsub.f32 %v56_v1, %v58_v3  ;;  %v67_v6 = vand.u32 127, %v66_v0 }
  0x10   :  { %v60_v7 = vadd.f32 1e-06, %v59_v4 }
  0x11   :  { %v62_v8 = vadd.f32 1e-06, %v61_v5  ;;  %vm68_vm0 = vcmp.lt.s32.totalorder %v67_v6, 32 }
  0x12   :  { %v63_v9 = vmul.f32 %v60_v7, %v60_v7 }
  0x13   :  { %v64_v10 = vmul.f32 %v62_v8, %v62_v8 }
  0x15   :  { %v65_v11 = vsub.f32 %v63_v9, %v64_v10 }
  0x17   :  { %v69_v12 = vsel %vm68_vm0, %v65_v11, 0.0 }
  0x18   :  { %70 = vadd.xlane.f32.xlu0 %v69_v12 }
  0x8b   :  { %v71_v13 = vpop.xlane.xlu0 %70 }
  0x8c   :  { %vm72_vm1 = vcmp.lt.f32.partialorder %v71_v13, 0.0 }
  0x8d   :  { %v80_v15 = vsel %vm72_vm1, 1, %v220_v14 }
  0x8e   :  { %v81_v16 = vrot.slane %v80_v15, 4 }
  0x90   :  { %v82_v17 = vadd.s32 %v81_v16, %v80_v15 }
  0x92   :  { %v83_v18 = vrot.slane %v82_v17, 2 }
  0x94   :  { %v84_v19 = vadd.s32 %v83_v18, %v82_v17 }
  0x96   :  { %v85_v20 = vrot.slane %v84_v19, 1 }
  0x98   :  { %v86_v21 = vadd.s32 %v85_v20, %v84_v19 }
  0x9a   :  { %108 = vpush %v86_v21 }
  0xcb   :  { %s109_s29 = spop %108 }
  0xcc   :  { %v88_v22 = vstv %s109_s29 }
  0xcd   :  { %89 = vst [vmem:[#allocation8] sm:$0xff] %v88_v22 }
  0xce   :  { %100 = dma.vmem_to_hbm [thread:$0]  %s96_s2, 128, %s98_s28, [#allocation4]  }
  0xcf   :  { %215 = dma.done.wait [#allocation4], 128  }
  0xd0   :  { %216 = vsyncadd [#allocation4], 4294967168 }
  0xd1   :  { %105 = vsyncpa [#allocation3], 1 }
  0xd2   :  { %106 = vsyncpa [#allocation6], 1 }
  0xd3   :  { %107 = vsyncpa [#allocation4], 1 }

</bundles_post_ra>
